<compile_context>
chip_gen: v6e
topology: v6e:2x2x1
jax: 0.10.0
libtpu: 0.0.40
codegen_flags: <defaults>
</compile_context>

<pallas_src>
import functools

import jax
import jax.numpy as jnp
from jax import lax
from jax.experimental import pallas as pl
from jax.experimental.pallas import tpu as pltpu

NUM_RELATIONS = 97
LANES = 128
NUM_CORE_SPLITS = 2   # v7x: 2 TensorCores.  Harmless on single-core v5e/v6e.


def _round_up(x, m):
    return (x + m - 1) // m * m


def _mloss_kernel(rows_ref,                        # SMEM (1,) i32: valid plane rows
                  delta_ref, label_ref, mask_ref,  # VMEM (TILE_R, 128) f32
                  outf_ref, outi_ref,              # VMEM (1, 1, 128) f32 / i32
                  acc_num, acc_den,                # VMEM (TILE_R, 128) f32
                  acc_gold, acc_pnum, acc_ptrue):  # VMEM (TILE_R, 128) i32
    t = pl.program_id(1)
    tpc = pl.num_programs(1)

    @pl.when(t == 0)
    def _init():
        acc_num[...] = jnp.zeros_like(acc_num)
        acc_den[...] = jnp.zeros_like(acc_den)
        acc_gold[...] = jnp.zeros_like(acc_gold)
        acc_pnum[...] = jnp.zeros_like(acc_pnum)
        acc_ptrue[...] = jnp.zeros_like(acc_ptrue)

    tile_r = delta_ref.shape[0]
    # Unclamped global tile index: rows at/after rows_ref[0] (ragged last tile
    # or a fully out-of-range tile on the short core) are invalidated here
    # instead of padding the inputs in the wrapper.
    global_tile = pl.program_id(0) * tpc + t
    row_iota = lax.broadcasted_iota(jnp.int32, (tile_r, LANES), 0)
    valid = (global_tile * tile_r + row_iota) < rows_ref[0]

    delta = delta_ref[...]                            # p1 - p0
    label_f = jnp.where(valid, label_ref[...], 0.0)   # 0/1, garbage -> 0
    m = jnp.where(valid, mask_ref[...], 0.0)          # 0/1, garbage -> 0
    label_b = label_f > 0.5
    mask_on = m > 0.0

    # Binary CE as a stable softplus: loss = softplus(x_other - x_picked)
    #   label==1 -> d = p0 - p1 = -delta ; label==0 -> d = p1 - p0 = delta
    d = jnp.where(label_b, -delta, delta)
    d = jnp.where(valid, d, 0.0)                      # keep the tail finite
    loss = jnp.maximum(d, 0.0) + jnp.log1p(jnp.exp(-jnp.abs(d)))
    pred_b = delta > 0.0                              # argmax != 0 (tie -> class 0)

    # Full-tile partial sums: pure VPU elementwise adds, no per-step reduce,
    # no lane-sparse (1,1) read-modify-write chains.
    acc_num[...] += loss * m
    acc_den[...] += m
    acc_gold[...] += (label_b & mask_on).astype(jnp.int32)
    acc_pnum[...] += (pred_b & mask_on).astype(jnp.int32)
    acc_ptrue[...] += (pred_b & label_b & mask_on).astype(jnp.int32)

    @pl.when(t == tpc - 1)
    def _finalize():
        # Single cross-lane/sublane reduce per core; pack the per-core partials
        # into one lane-dense 128-wide row per output.
        lane = lax.broadcasted_iota(jnp.int32, (1, 1, LANES), 2)
        s_num = jnp.sum(acc_num[...])
        s_den = jnp.sum(acc_den[...])
        outf_ref[...] = jnp.where(lane == 0, s_num,
                                  jnp.where(lane == 1, s_den, 0.0))
        c_gold = jnp.sum(acc_gold[...])
        c_pnum = jnp.sum(acc_pnum[...])
        c_ptrue = jnp.sum(acc_ptrue[...])
        outi_ref[...] = jnp.where(lane == 0, c_gold,
                                  jnp.where(lane == 1, c_pnum,
                                            jnp.where(lane == 2, c_ptrue, 0)))


@functools.partial(jax.jit, static_argnames=("tile_rows", "num_core_splits"))
def ce_loss_forward(pred, relations, relation_mask, *, tile_rows=512,
                    num_core_splits=NUM_CORE_SPLITS):
    """Returns (pred, loss, (gold_num, pred_num, pred_true))."""
    num_classes = pred.shape[-1]
    if num_classes != 2:
        raise NotImplementedError("binary relation-existence head expected (C == 2)")
    pred2 = pred.reshape(-1, num_classes).astype(jnp.float32)
    n = pred2.shape[0]

    # ---- wrapper-side fused XLA prep: relations is read exactly once -------
    rel2 = relations.reshape(-1, NUM_RELATIONS)
    label = (jnp.sum(rel2[:, 1:], axis=-1) != 0).astype(jnp.float32)     # (n,)
    mask = relation_mask.reshape(-1).astype(jnp.float32)                 # (n,)
    delta = pred2[:, 1] - pred2[:, 0]                                    # (n,)

    # Lane-dense (rows, 128) planes.  Only these 4 B/row columns get a tiny
    # (<1024-row, mask=0) pad up to an 8*128 boundary — the full-copy pads of
    # pred/relations/mask from the previous version are gone.
    rows = _round_up(pl.cdiv(n, LANES), 8)
    n_pad = rows * LANES

    def plane(x):
        return jnp.pad(x, (0, n_pad - n)).reshape(rows, LANES)

    delta_p, label_p, mask_p = plane(delta), plane(label), plane(mask)

    tile_r = min(tile_rows, rows)                       # both multiples of 8
    num_tiles = pl.cdiv(rows, tile_r)
    tiles_per_core = pl.cdiv(num_tiles, num_core_splits)

    def in_map(c, t, rows_smem):
        # Clamp so a fully out-of-range tile (short core / ragged tail) still
        # issues an in-bounds DMA; its rows are discarded by the iota mask.
        return (jnp.minimum(c * tiles_per_core + t, num_tiles - 1), 0)

    def out_map(c, t, rows_smem):
        return (c, 0, 0)

    grid_spec = pltpu.PrefetchScalarGridSpec(
        num_scalar_prefetch=1,
        grid=(num_core_splits, tiles_per_core),
        in_specs=[
            pl.BlockSpec((tile_r, LANES), in_map),      # delta plane
            pl.BlockSpec((tile_r, LANES), in_map),      # label plane
            pl.BlockSpec((tile_r, LANES), in_map),      # mask plane
        ],
        out_specs=(
            pl.BlockSpec((1, 1, LANES), out_map),       # f32 partials per core
            pl.BlockSpec((1, 1, LANES), out_map),       # i32 partials per core
        ),
        scratch_shapes=[
            pltpu.VMEM((tile_r, LANES), jnp.float32),   # sum(loss*mask) partials
            pltpu.VMEM((tile_r, LANES), jnp.float32),   # sum(mask) partials
            pltpu.VMEM((tile_r, LANES), jnp.int32),     # gold partials
            pltpu.VMEM((tile_r, LANES), jnp.int32),     # pred_num partials
            pltpu.VMEM((tile_r, LANES), jnp.int32),     # pred_true partials
        ],
    )
    outf, outi = pl.pallas_call(
        _mloss_kernel,
        out_shape=(
            jax.ShapeDtypeStruct((num_core_splits, 1, LANES), jnp.float32),
            jax.ShapeDtypeStruct((num_core_splits, 1, LANES), jnp.int32),
        ),
        grid_spec=grid_spec,
        compiler_params=pltpu.CompilerParams(
            dimension_semantics=("parallel", "arbitrary"),
        ),
    )(jnp.array([rows], jnp.int32), delta_p, label_p, mask_p)

    # Combine per-core partials; divide + counter handling in the wrapper.
    sums_f = jnp.sum(outf[:, 0, :], axis=0)             # (128,) f32
    sums_i = jnp.sum(outi[:, 0, :], axis=0)             # (128,) i32 (exact)
    loss = sums_f[0] / sums_f[1]
    return pred, loss, (sums_i[0], sums_i[1], sums_i[2])


def _reference(pred, relations, relation_mask):
    """Pure-JAX reference mirroring the PyTorch module."""
    num_classes = pred.shape[-1]
    pred2 = pred.reshape(-1, num_classes).astype(jnp.float32)
    rel2 = relations.reshape(-1, NUM_RELATIONS)
    mask = relation_mask.reshape(-1).astype(jnp.float32)
    label = jnp.sum(rel2[:, 1:], axis=-1) != 0
    logp = jax.nn.log_softmax(pred2, axis=-1)
    loss = -jnp.take_along_axis(logp, label.astype(jnp.int32)[:, None], axis=-1)[:, 0]
    loss = jnp.sum(loss * mask) / jnp.sum(mask)
    new_pred = jnp.argmax(pred2, axis=-1) != 0
    mb = mask != 0
    return loss, (jnp.sum(label & mb), jnp.sum(new_pred & mb),
                  jnp.sum(new_pred & label & mb))


if __name__ == "__main__":
    key = jax.random.PRNGKey(0)

    def run_case(case_id, batch, seq, tile_rows):
        k1, k2, k3 = jax.random.split(jax.random.fold_in(key, case_id), 3)
        pred = jax.random.normal(k1, (batch, seq, 2), jnp.float32)
        relations = (jax.random.uniform(k2, (batch, seq, NUM_RELATIONS)) < 0.05
                     ).astype(jnp.float32)
        relation_mask = (jax.random.uniform(k3, (batch, seq)) < 0.7
                         ).astype(jnp.float32)
        relation_mask = relation_mask.at[0, 0].set(1.0)   # ensure mask.sum() > 0

        out_pred, loss, (gold, pnum, ptrue) = ce_loss_forward(
            pred, relations, relation_mask, tile_rows=tile_rows)
        jax.block_until_ready((out_pred, loss, gold, pnum, ptrue))

        ref_loss, (rg, rp, rt) = _reference(pred, relations, relation_mask)
        assert jnp.allclose(loss, ref_loss, atol=1e-5, rtol=1e-5), (case_id, loss, ref_loss)
        assert int(gold) == int(rg), (case_id, int(gold), int(rg))
        assert int(pnum) == int(rp), (case_id, int(pnum), int(rp))
        assert int(ptrue) == int(rt), (case_id, int(ptrue), int(rt))

    # Small shape implied by the module (batch=2, 8 relation pairs, 2 classes).
    run_case(0, batch=2, seq=8, tile_rows=512)
    # Single tile per core, ragged sub-128 tail.
    run_case(1, batch=2, seq=600, tile_rows=512)
    # Multi-tile per core + a fully out-of-range (clamped + masked) tile on the
    # second core: 2400 rows -> 24 plane rows -> 3 tiles of 8 -> grid (2, 2).
    run_case(2, batch=2, seq=1200, tile_rows=8)

    print("KERNEL_OK")
</pallas_src>

<mosaic_0001>
module attributes {stable_mosaic.version = 11 : i64} {
  func.func @_mloss_kernel(%arg0: i32, %arg1: i32, %arg2: memref<1xi32, #tpu.memory_space<smem>>, %arg3: memref<8x128xf32, #tpu.memory_space<vmem>>, %arg4: memref<8x128xf32, #tpu.memory_space<vmem>>, %arg5: memref<8x128xf32, #tpu.memory_space<vmem>>, %arg6: memref<1x1x128xf32, #tpu.memory_space<vmem>>, %arg7: memref<1x1x128xi32, #tpu.memory_space<vmem>>, %arg8: memref<8x128xf32, #tpu.memory_space<vmem>>, %arg9: memref<8x128xf32, #tpu.memory_space<vmem>>, %arg10: memref<8x128xi32, #tpu.memory_space<vmem>>, %arg11: memref<8x128xi32, #tpu.memory_space<vmem>>, %arg12: memref<8x128xi32, #tpu.memory_space<vmem>>) attributes {dimension_semantics = [#tpu.dimension_semantics<parallel>, #tpu.dimension_semantics<arbitrary>], iteration_bounds = array<i64: 2, 1>, scalar_prefetch = 1 : i64, scratch_operands = 5 : i64, tpu.core_type = #tpu.core_type<tc>, window_params = [{transform_indices = @transform_0, window_bounds = array<i64: 8, 128>}, {transform_indices = @transform_1, window_bounds = array<i64: 8, 128>}, {transform_indices = @transform_2, window_bounds = array<i64: 8, 128>}, {transform_indices = @transform_3, window_bounds = array<i64: 1, 1, 128>}, {transform_indices = @transform_4, window_bounds = array<i64: 1, 1, 128>}]} {
    %c0_i32 = arith.constant 0 : i32
    %0 = arith.cmpi eq, %arg1, %c0_i32 : i32
    %1 = arith.extui %0 : i1 to i32
    %c0_i32_0 = arith.constant 0 : i32
    %2 = arith.cmpi ne, %1, %c0_i32_0 : i32
    scf.if %2 {
      %cst_37 = arith.constant 0.000000e+00 : f32
      %64 = vector.broadcast %cst_37 : f32 to vector<8x128xf32>
      %c0_38 = arith.constant 0 : index
      %c0_39 = arith.constant 0 : index
      %65 = vector.load %arg8[%c0_38, %c0_39] : memref<8x128xf32, #tpu.memory_space<vmem>>, vector<8x128xf32>
      tpu.vector_store %arg8[%c0_38, %c0_39], %64 {strides = array<i32>} : memref<8x128xf32, #tpu.memory_space<vmem>>, vector<8x128xf32>,
      %cst_40 = arith.constant 0.000000e+00 : f32
      %66 = vector.broadcast %cst_40 : f32 to vector<8x128xf32>
      %c0_41 = arith.constant 0 : index
      %c0_42 = arith.constant 0 : index
      %67 = vector.load %arg9[%c0_41, %c0_42] : memref<8x128xf32, #tpu.memory_space<vmem>>, vector<8x128xf32>
      tpu.vector_store %arg9[%c0_41, %c0_42], %66 {strides = array<i32>} : memref<8x128xf32, #tpu.memory_space<vmem>>, vector<8x128xf32>,
      %c0_i32_43 = arith.constant 0 : i32
      %68 = vector.broadcast %c0_i32_43 : i32 to vector<8x128xi32>
      %c0_44 = arith.constant 0 : index
      %c0_45 = arith.constant 0 : index
      %69 = vector.load %arg10[%c0_44, %c0_45] : memref<8x128xi32, #tpu.memory_space<vmem>>, vector<8x128xi32>
      tpu.vector_store %arg10[%c0_44, %c0_45], %68 {strides = array<i32>} : memref<8x128xi32, #tpu.memory_space<vmem>>, vector<8x128xi32>,
      %c0_i32_46 = arith.constant 0 : i32
      %70 = vector.broadcast %c0_i32_46 : i32 to vector<8x128xi32>
      %c0_47 = arith.constant 0 : index
      %c0_48 = arith.constant 0 : index
      %71 = vector.load %arg11[%c0_47, %c0_48] : memref<8x128xi32, #tpu.memory_space<vmem>>, vector<8x128xi32>
      tpu.vector_store %arg11[%c0_47, %c0_48], %70 {strides = array<i32>} : memref<8x128xi32, #tpu.memory_space<vmem>>, vector<8x128xi32>,
      %c0_i32_49 = arith.constant 0 : i32
      %72 = vector.broadcast %c0_i32_49 : i32 to vector<8x128xi32>
      %c0_50 = arith.constant 0 : index
      %c0_51 = arith.constant 0 : index
      %73 = vector.load %arg12[%c0_50, %c0_51] : memref<8x128xi32, #tpu.memory_space<vmem>>, vector<8x128xi32>
      tpu.vector_store %arg12[%c0_50, %c0_51], %72 {strides = array<i32>} : memref<8x128xi32, #tpu.memory_space<vmem>>, vector<8x128xi32>,
    } else {
    }
    %c1_i32 = arith.constant 1 : i32
    %3 = arith.muli %arg0, %c1_i32 : i32
    %4 = arith.addi %3, %arg1 : i32
    %5 = tpu.iota {dimensions = array<i32: 0>} : vector<8x128xi32>
    %c8_i32 = arith.constant 8 : i32
    %6 = arith.muli %4, %c8_i32 : i32
    %7 = vector.broadcast %6 : i32 to vector<8x128xi32>
    %8 = arith.addi %7, %5 : vector<8x128xi32>
    %c0 = arith.constant 0 : index
    %9 = memref.load %arg2[%c0] : memref<1xi32, #tpu.memory_space<smem>>
    %10 = vector.broadcast %9 : i32 to vector<8x128xi32>
    %11 = arith.cmpi slt, %8, %10 : vector<8x128xi32>
    %c0_1 = arith.constant 0 : index
    %c0_2 = arith.constant 0 : index
    %12 = vector.load %arg3[%c0_1, %c0_2] : memref<8x128xf32, #tpu.memory_space<vmem>>, vector<8x128xf32>
    %c0_3 = arith.constant 0 : index
    %c0_4 = arith.constant 0 : index
    %13 = vector.load %arg4[%c0_3, %c0_4] : memref<8x128xf32, #tpu.memory_space<vmem>>, vector<8x128xf32>
    %cst = arith.constant 0.000000e+00 : f32
    %14 = vector.broadcast %cst : f32 to vector<8x128xf32>
    %15 = arith.select %11, %13, %14 : vector<8x128xi1>, vector<8x128xf32>
    %c0_5 = arith.constant 0 : index
    %c0_6 = arith.constant 0 : index
    %16 = vector.load %arg5[%c0_5, %c0_6] : memref<8x128xf32, #tpu.memory_space<vmem>>, vector<8x128xf32>
    %cst_7 = arith.constant 0.000000e+00 : f32
    %17 = vector.broadcast %cst_7 : f32 to vector<8x128xf32>
    %18 = arith.select %11, %16, %17 : vector<8x128xi1>, vector<8x128xf32>
    %cst_8 = arith.constant 5.000000e-01 : f32
    %19 = vector.broadcast %cst_8 : f32 to vector<8x128xf32>
    %20 = arith.cmpf ogt, %15, %19 : vector<8x128xf32>
    %cst_9 = arith.constant 0.000000e+00 : f32
    %21 = vector.broadcast %cst_9 : f32 to vector<8x128xf32>
    %22 = arith.cmpf ogt, %18, %21 : vector<8x128xf32>
    %cst_10 = arith.constant 0.000000e+00 : f32
    %23 = vector.broadcast %cst_10 : f32 to vector<8x128xf32>
    %24 = arith.subf %23, %12 : vector<8x128xf32>
    %25 = arith.select %20, %24, %12 : vector<8x128xi1>, vector<8x128xf32>
    %cst_11 = arith.constant 0.000000e+00 : f32
    %26 = vector.broadcast %cst_11 : f32 to vector<8x128xf32>
    %27 = arith.select %11, %25, %26 : vector<8x128xi1>, vector<8x128xf32>
    %cst_12 = arith.constant 0.000000e+00 : f32
    %28 = vector.broadcast %cst_12 : f32 to vector<8x128xf32>
    %29 = arith.maximumf %27, %28 : vector<8x128xf32>
    %30 = math.absf %27 : vector<8x128xf32>
    %cst_13 = arith.constant 0.000000e+00 : f32
    %31 = vector.broadcast %cst_13 : f32 to vector<8x128xf32>
    %32 = arith.subf %31, %30 : vector<8x128xf32>
    %33 = math.exp %32 : vector<8x128xf32>
    %34 = math.log1p %33 : vector<8x128xf32>
    %35 = arith.addf %29, %34 : vector<8x128xf32>
    %cst_14 = arith.constant 0.000000e+00 : f32
    %36 = vector.broadcast %cst_14 : f32 to vector<8x128xf32>
    %37 = arith.cmpf ogt, %12, %36 : vector<8x128xf32>
    %c0_15 = arith.constant 0 : index
    %c0_16 = arith.constant 0 : index
    %38 = vector.load %arg8[%c0_15, %c0_16] : memref<8x128xf32, #tpu.memory_space<vmem>>, vector<8x128xf32>
    %39 = arith.mulf %35, %18 : vector<8x128xf32>
    %40 = arith.addf %38, %39 : vector<8x128xf32>
    %c0_17 = arith.constant 0 : index
    %c0_18 = arith.constant 0 : index
    %41 = vector.load %arg8[%c0_17, %c0_18] : memref<8x128xf32, #tpu.memory_space<vmem>>, vector<8x128xf32>
    tpu.vector_store %arg8[%c0_17, %c0_18], %40 {strides = array<i32>} : memref<8x128xf32, #tpu.memory_space<vmem>>, vector<8x128xf32>,
    %c0_19 = arith.constant 0 : index
    %c0_20 = arith.constant 0 : index
    %42 = vector.load %arg9[%c0_19, %c0_20] : memref<8x128xf32, #tpu.memory_space<vmem>>, vector<8x128xf32>
    %43 = arith.addf %42, %18 : vector<8x128xf32>
    %c0_21 = arith.constant 0 : index
    %c0_22 = arith.constant 0 : index
    %44 = vector.load %arg9[%c0_21, %c0_22] : memref<8x128xf32, #tpu.memory_space<vmem>>, vector<8x128xf32>
    tpu.vector_store %arg9[%c0_21, %c0_22], %43 {strides = array<i32>} : memref<8x128xf32, #tpu.memory_space<vmem>>, vector<8x128xf32>,
    %c0_23 = arith.constant 0 : index
    %c0_24 = arith.constant 0 : index
    %45 = vector.load %arg10[%c0_23, %c0_24] : memref<8x128xi32, #tpu.memory_space<vmem>>, vector<8x128xi32>
    %46 = arith.andi %20, %22 : vector<8x128xi1>
    %47 = arith.extui %46 : vector<8x128xi1> to vector<8x128xi32>
    %48 = arith.addi %45, %47 : vector<8x128xi32>
    %c0_25 = arith.constant 0 : index
    %c0_26 = arith.constant 0 : index
    %49 = vector.load %arg10[%c0_25, %c0_26] : memref<8x128xi32, #tpu.memory_space<vmem>>, vector<8x128xi32>
    tpu.vector_store %arg10[%c0_25, %c0_26], %48 {strides = array<i32>} : memref<8x128xi32, #tpu.memory_space<vmem>>, vector<8x128xi32>,
    %c0_27 = arith.constant 0 : index
    %c0_28 = arith.constant 0 : index
    %50 = vector.load %arg11[%c0_27, %c0_28] : memref<8x128xi32, #tpu.memory_space<vmem>>, vector<8x128xi32>
    %51 = arith.andi %37, %22 : vector<8x128xi1>
    %52 = arith.extui %51 : vector<8x128xi1> to vector<8x128xi32>
    %53 = arith.addi %50, %52 : vector<8x128xi32>
    %c0_29 = arith.constant 0 : index
    %c0_30 = arith.constant 0 : index
    %54 = vector.load %arg11[%c0_29, %c0_30] : memref<8x128xi32, #tpu.memory_space<vmem>>, vector<8x128xi32>
    tpu.vector_store %arg11[%c0_29, %c0_30], %53 {strides = array<i32>} : memref<8x128xi32, #tpu.memory_space<vmem>>, vector<8x128xi32>,
    %c0_31 = arith.constant 0 : index
    %c0_32 = arith.constant 0 : index
    %55 = vector.load %arg12[%c0_31, %c0_32] : memref<8x128xi32, #tpu.memory_space<vmem>>, vector<8x128xi32>
    %56 = arith.andi %37, %20 : vector<8x128xi1>
    %57 = arith.andi %56, %22 : vector<8x128xi1>
    %58 = arith.extui %57 : vector<8x128xi1> to vector<8x128xi32>
    %59 = arith.addi %55, %58 : vector<8x128xi32>
    %c0_33 = arith.constant 0 : index
    %c0_34 = arith.constant 0 : index
    %60 = vector.load %arg12[%c0_33, %c0_34] : memref<8x128xi32, #tpu.memory_space<vmem>>, vector<8x128xi32>
    tpu.vector_store %arg12[%c0_33, %c0_34], %59 {strides = array<i32>} : memref<8x128xi32, #tpu.memory_space<vmem>>, vector<8x128xi32>,
    %c0_i32_35 = arith.constant 0 : i32
    %61 = arith.cmpi eq, %arg1, %c0_i32_35 : i32
    %62 = arith.extui %61 : i1 to i32
    %c0_i32_36 = arith.constant 0 : i32
    %63 = arith.cmpi ne, %62, %c0_i32_36 : i32
    scf.if %63 {
      %64 = tpu.iota {dimensions = array<i32: 2>} : vector<1x1x128xi32>
      %c0_37 = arith.constant 0 : index
      %c0_38 = arith.constant 0 : index
      %65 = vector.load %arg8[%c0_37, %c0_38] : memref<8x128xf32, #tpu.memory_space<vmem>>, vector<8x128xf32>
      %66 = vector.shape_cast %65 : vector<8x128xf32> to vector<1x8x128xf32>
      %cst_39 = arith.constant dense<0.000000e+00> : vector<1xf32>
      %67 = vector.multi_reduction <add>, %66, %cst_39 [1, 2] : vector<1x8x128xf32> to vector<1xf32>
      %68 = vector.shape_cast %67 : vector<1xf32> to vector<1x1x1xf32>
      %69 = vector.extract %68[0, 0, 0] : f32 from vector<1x1x1xf32>
      %c0_40 = arith.constant 0 : index
      %c0_41 = arith.constant 0 : index
      %70 = vector.load %arg9[%c0_40, %c0_41] : memref<8x128xf32, #tpu.memory_space<vmem>>, vector<8x128xf32>
      %71 = vector.shape_cast %70 : vector<8x128xf32> to vector<1x8x128xf32>
      %cst_42 = arith.constant dense<0.000000e+00> : vector<1xf32>
      %72 = vector.multi_reduction <add>, %71, %cst_42 [1, 2] : vector<1x8x128xf32> to vector<1xf32>
      %73 = vector.shape_cast %72 : vector<1xf32> to vector<1x1x1xf32>
      %74 = vector.extract %73[0, 0, 0] : f32 from vector<1x1x1xf32>
      %c0_i32_43 = arith.constant 0 : i32
      %75 = vector.broadcast %c0_i32_43 : i32 to vector<1x1x128xi32>
      %76 = arith.cmpi eq, %64, %75 : vector<1x1x128xi32>
      %c1_i32_44 = arith.constant 1 : i32
      %77 = vector.broadcast %c1_i32_44 : i32 to vector<1x1x128xi32>
      %78 = arith.cmpi eq, %64, %77 : vector<1x1x128xi32>
      %cst_45 = arith.constant 0.000000e+00 : f32
      %79 = vector.broadcast %74 : f32 to vector<1x1x128xf32>
      %80 = vector.broadcast %cst_45 : f32 to vector<1x1x128xf32>
      %81 = arith.select %78, %79, %80 : vector<1x1x128xi1>, vector<1x1x128xf32>
      %82 = vector.broadcast %69 : f32 to vector<1x1x128xf32>
      %83 = arith.select %76, %82, %81 : vector<1x1x128xi1>, vector<1x1x128xf32>
      %c0_46 = arith.constant 0 : index
      %c0_47 = arith.constant 0 : index
      %c0_48 = arith.constant 0 : index
      %84 = vector.load %arg6[%c0_46, %c0_47, %c0_48] : memref<1x1x128xf32, #tpu.memory_space<vmem>>, vector<1x1x128xf32>
      tpu.vector_store %arg6[%c0_46, %c0_47, %c0_48], %83 {strides = array<i32>} : memref<1x1x128xf32, #tpu.memory_space<vmem>>, vector<1x1x128xf32>,
      %c0_49 = arith.constant 0 : index
      %c0_50 = arith.constant 0 : index
      %85 = vector.load %arg10[%c0_49, %c0_50] : memref<8x128xi32, #tpu.memory_space<vmem>>, vector<8x128xi32>
      %86 = vector.shape_cast %85 : vector<8x128xi32> to vector<1x8x128xi32>
      %cst_51 = arith.constant dense<0> : vector<1xi32>
      %87 = vector.multi_reduction <add>, %86, %cst_51 [1, 2] : vector<1x8x128xi32> to vector<1xi32>
      %88 = vector.shape_cast %87 : vector<1xi32> to vector<1x1x1xi32>
      %89 = vector.extract %88[0, 0, 0] : i32 from vector<1x1x1xi32>
      %c0_52 = arith.constant 0 : index
      %c0_53 = arith.constant 0 : index
      %90 = vector.load %arg11[%c0_52, %c0_53] : memref<8x128xi32, #tpu.memory_space<vmem>>, vector<8x128xi32>
      %91 = vector.shape_cast %90 : vector<8x128xi32> to vector<1x8x128xi32>
      %cst_54 = arith.constant dense<0> : vector<1xi32>
      %92 = vector.multi_reduction <add>, %91, %cst_54 [1, 2] : vector<1x8x128xi32> to vector<1xi32>
      %93 = vector.shape_cast %92 : vector<1xi32> to vector<1x1x1xi32>
      %94 = vector.extract %93[0, 0, 0] : i32 from vector<1x1x1xi32>
      %c0_55 = arith.constant 0 : index
      %c0_56 = arith.constant 0 : index
      %95 = vector.load %arg12[%c0_55, %c0_56] : memref<8x128xi32, #tpu.memory_space<vmem>>, vector<8x128xi32>
      %96 = vector.shape_cast %95 : vector<8x128xi32> to vector<1x8x128xi32>
      %cst_57 = arith.constant dense<0> : vector<1xi32>
      %97 = vector.multi_reduction <add>, %96, %cst_57 [1, 2] : vector<1x8x128xi32> to vector<1xi32>
      %98 = vector.shape_cast %97 : vector<1xi32> to vector<1x1x1xi32>
      %99 = vector.extract %98[0, 0, 0] : i32 from vector<1x1x1xi32>
      %c0_i32_58 = arith.constant 0 : i32
      %100 = vector.broadcast %c0_i32_58 : i32 to vector<1x1x128xi32>
      %101 = arith.cmpi eq, %64, %100 : vector<1x1x128xi32>
      %c1_i32_59 = arith.constant 1 : i32
      %102 = vector.broadcast %c1_i32_59 : i32 to vector<1x1x128xi32>
      %103 = arith.cmpi eq, %64, %102 : vector<1x1x128xi32>
      %c2_i32 = arith.constant 2 : i32
      %104 = vector.broadcast %c2_i32 : i32 to vector<1x1x128xi32>
      %105 = arith.cmpi eq, %64, %104 : vector<1x1x128xi32>
      %c0_i32_60 = arith.constant 0 : i32
      %106 = vector.broadcast %99 : i32 to vector<1x1x128xi32>
      %107 = vector.broadcast %c0_i32_60 : i32 to vector<1x1x128xi32>
      %108 = arith.select %105, %106, %107 : vector<1x1x128xi1>, vector<1x1x128xi32>
      %109 = vector.broadcast %94 : i32 to vector<1x1x128xi32>
      %110 = arith.select %103, %109, %108 : vector<1x1x128xi1>, vector<1x1x128xi32>
      %111 = vector.broadcast %89 : i32 to vector<1x1x128xi32>
      %112 = arith.select %101, %111, %110 : vector<1x1x128xi1>, vector<1x1x128xi32>
      %c0_61 = arith.constant 0 : index
      %c0_62 = arith.constant 0 : index
      %c0_63 = arith.constant 0 : index
      %113 = vector.load %arg7[%c0_61, %c0_62, %c0_63] : memref<1x1x128xi32, #tpu.memory_space<vmem>>, vector<1x1x128xi32>
      tpu.vector_store %arg7[%c0_61, %c0_62, %c0_63], %112 {strides = array<i32>} : memref<1x1x128xi32, #tpu.memory_space<vmem>>, vector<1x1x128xi32>,
    } else {
    }
    return
  }
  func.func @transform_0(%arg0: i32, %arg1: i32, %arg2: memref<1xi32, #tpu.memory_space<smem>>) -> (i32, i32) {
    %c1_i32 = arith.constant 1 : i32
    %0 = arith.muli %arg0, %c1_i32 : i32
    %1 = arith.addi %0, %arg1 : i32
    %c0_i32 = arith.constant 0 : i32
    %2 = arith.minsi %1, %c0_i32 : i32
    %c0_i32_0 = arith.constant 0 : i32
    %c0_i32_1 = arith.constant 0 : i32
    return %2, %c0_i32_0 : i32, i32
  }
  func.func @transform_1(%arg0: i32, %arg1: i32, %arg2: memref<1xi32, #tpu.memory_space<smem>>) -> (i32, i32) {
    %c1_i32 = arith.constant 1 : i32
    %0 = arith.muli %arg0, %c1_i32 : i32
    %1 = arith.addi %0, %arg1 : i32
    %c0_i32 = arith.constant 0 : i32
    %2 = arith.minsi %1, %c0_i32 : i32
    %c0_i32_0 = arith.constant 0 : i32
    %c0_i32_1 = arith.constant 0 : i32
    return %2, %c0_i32_0 : i32, i32
  }
  func.func @transform_2(%arg0: i32, %arg1: i32, %arg2: memref<1xi32, #tpu.memory_space<smem>>) -> (i32, i32) {
    %c1_i32 = arith.constant 1 : i32
    %0 = arith.muli %arg0, %c1_i32 : i32
    %1 = arith.addi %0, %arg1 : i32
    %c0_i32 = arith.constant 0 : i32
    %2 = arith.minsi %1, %c0_i32 : i32
    %c0_i32_0 = arith.constant 0 : i32
    %c0_i32_1 = arith.constant 0 : i32
    return %2, %c0_i32_0 : i32, i32
  }
  func.func @transform_3(%arg0: i32, %arg1: i32, %arg2: memref<1xi32, #tpu.memory_space<smem>>) -> (i32, i32, i32) {
    %c0_i32 = arith.constant 0 : i32
    %c0_i32_0 = arith.constant 0 : i32
    %c0_i32_1 = arith.constant 0 : i32
    return %arg0, %c0_i32, %c0_i32_0 : i32, i32, i32
  }
  func.func @transform_4(%arg0: i32, %arg1: i32, %arg2: memref<1xi32, #tpu.memory_space<smem>>) -> (i32, i32, i32) {
    %c0_i32 = arith.constant 0 : i32
    %c0_i32_0 = arith.constant 0 : i32
    %c0_i32_1 = arith.constant 0 : i32
    return %arg0, %c0_i32, %c0_i32_0 : i32, i32, i32
  }
}

</mosaic_0001>

<bundles_post_ra>
// kernel: ce_loss_forward.1
= control target key start
LH: loop header
LB: loop body
LE: loop exit
PB: predicated region body
PF: predicated region fallthrough
CT: control target
= control target key end

     0   :  { %s699_s20 = smov 0   ;;  %s701_s21 = smov 0   ;;  %s764_s0 = inlined_call_operand.<no memory space> [shape: s32[1], index: 0, kind: input, shape index: {}]   ;;  %s765_s1 = inlined_call_operand.vmem [shape: f32[8,128], index: 1, kind: input, shape index: {}]   ;;  %s766_s2 = inlined_call_operand.vmem [shape: f32[8,128], index: 2, kind: input, shape index: {}]   ;;  %s767_s3 = inlined_call_operand.vmem [shape: f32[8,128], index: 3, kind: input, shape index: {}]   ;;  %s768_s4 = inlined_call_operand.vmem [shape: f32[2,1,128], index: 4, kind: output, shape index: {0}]   ;;  %s769_s5 = inlined_call_operand.vmem [shape: s32[2,1,128], index: 5, kind: output, shape index: {1}]  }
   0x1   :  { %11 = sst [smem:[#allocation8]] %s764_s0  ;;  %s703_s22 = smov 0  }
   0x2 LB: > { %s29_s0 = sadd.s32 1, %s659_s21  ;;  %p586_p0 = scmp.ge.s32.totalorder %s663_s22, 1  ;;  %s663_s22 = sphi %s703_s22, %s17_s22   ;;  %s659_s21 = sphi %s701_s21, %s773_s21   ;;  %s655_s20 = sphi %s699_s20, %s772_s20  }
   0x3   : > { %p31_p1 = scmp.ge.s32.totalorder %s29_s0, 2  ;;  %p232_p2 = scmp.lt.s32.totalorder %s663_s22, 3 }
   0x5   : > { %s775_s0 = smov (%p31_p1, %s29_s0), 0  ;;  %p233_p3 = pnand %p586_p0, %p232_p2 }
   0x6   : > { %p276_p4 = scmp.lt.s32.totalorder (!%p233_p3), %s655_s20, 0  ;;  %s599_s23 = sshll.u32 (!%p233_p3), %s655_s20, 3 }
   0x7   : > { %236 = sbr.rel (%p233_p3) target bundleno = 276 (0x114), region = 32  ;;  %s326_s24 = sld [smem:[#allocation8]] (!%p233_p3) }
   0x8   : > { %p305_p5 = scmp.lt.s32.totalorder (!%p233_p3), %s655_s20, 1 }
   0xc   : > { %v321_v0 = vlaneseq  ;;  %v324_v1 = vstv %s599_s23  ;;  %s277_s25 = scalar_select %p276_p4, %s655_s20, 0  ;;  %v665_v12 = vmov 0  }
   0xd   : > { %v327_v4 = vstv %s326_s24  ;;  %s779_s20 = smov (!%p305_p5, %s655_s20), 1 }
   0xe   : > { %v322_v2 = vshrl.u32 %v321_v0, 7  ;;  %s777_s25 = smov (!%p276_p4, %s277_s25), 0  ;;  %s307_s15 = scalar_lea.vmem %s768_s4, %s779_s20 }
   0xf   : > { %s590_s26 = sshll.u32 %s777_s25, 3  ;;  %s310_s24 = scalar_lea.vmem %s769_s5, %s779_s20 }
  0x10   : > { %v325_v3 = vadd.s32 %v324_v1, %v322_v2  ;;  %s291_s29 = scalar_lea.vmem %s766_s2, %s590_s26  ;;  %s301_s7 = scalar_lea.vmem %s767_s3, %s590_s26 }
  0x11   : > { %v330_v6 = vld [vmem:[%s291_s29] sm:$0xff]  ;;  %s281_s10 = scalar_lea.vmem %s765_s1, %s590_s26 }
  0x12   : > { %vm729_vm0 = vcmp.lt.s32.totalorder %v325_v3, %v327_v4  ;;  %v332_v7 = vld [vmem:[%s301_s7] sm:$0xff] }
  0x13   : > { %v331_v8 = vsel %vm729_vm0, %v330_v6, 0.0  ;;  %v333_v9 = vsel %vm729_vm0, %v332_v7, 0.0  ;;  %v329_v10 = vld [vmem:[%s281_s10] sm:$0xff] }
  0x14   : > { %vm334_vm1 = vcmp.gt.f32.partialorder %v331_v8, 0.5  ;;  %vm335_vm2 = vcmp.gt.f32.partialorder %v333_v9, 0.0  ;;  %v336_v11 = vsub.f32 0.0, %v329_v10  ;;  %vm354_vm3 = vcmp.gt.f32.partialorder %v329_v10, 0.0 }
  0x15   : > { %vm363_vm4 = vmand %vm334_vm1, %vm335_vm2 }
  0x16   : > { %v364_v13 = vsel %vm363_vm4, 1, %v665_v12  ;;  %v337_v14 = vsel %vm334_vm1, %v336_v11, %v329_v10  ;;  %vm373_vm5 = vmand %vm354_vm3, %vm334_vm1 }
  0x17   : > { %v412_v15 = vshrl.u32 %v364_v13, 16  ;;  %v411_v16 = vand.u32 65535, %v364_v13  ;;  %vm374_vm6 = vmand %vm373_vm5, %vm335_vm2  ;;  %v338_v17 = vsel %vm729_vm0, %v337_v14, 0.0 }
  0x18   : > { %v375_v18 = vsel %vm374_vm6, 1, %v665_v12  ;;  %vm368_vm7 = vmand %vm354_vm3, %vm335_vm2  ;;  %v340_v19 = vand.u32 2147483647, %v338_v17  ;;  %v339_v40 = vmax.f32 %v338_v17, 0.0 }
  0x19   : > { %v414_v20 = vcvt.s32.f32 %v412_v15  ;;  %v413_v21 = vcvt.s32.f32 %v411_v16  ;;  %v452_v22 = vshrl.u32 %v375_v18, 16  ;;  %v369_v23 = vsel %vm368_vm7, 1, %v665_v12 }
  0x1a   : > { %v432_v24 = vshrl.u32 %v369_v23, 16  ;;  %v341_v25 = vsub.f32 0.0, %v340_v19  ;;  %v451_v27 = vand.u32 65535, %v375_v18  ;;  %v431_v28 = vand.u32 65535, %v369_v23 }
  0x1b   : > { %417 = vadd.xlane.f32.xlu0 %v414_v20  ;;  %415 = vadd.xlane.f32.xlu1 %v413_v21  ;;  %v454_v26 = vcvt.s32.f32 %v452_v22 }
  0x1c   : > { %v434_v29 = vcvt.s32.f32 %v432_v24  ;;  %v342_v30 = vmul.f32 1.442695, %v341_v25  ;;  %v453_v31 = vcvt.s32.f32 %v451_v27  ;;  %v433_v32 = vcvt.s32.f32 %v431_v28 }
  0x1e   : > { %637 = vpow2.f32 %v342_v30 }
  0x1f   : > { %457 = vadd.xlane.f32.xlu1 %v454_v26  ;;  %437 = vadd.xlane.f32.xlu0 %v434_v29 }
  0x23   : > { %455 = vadd.xlane.f32.xlu1 %v453_v31  ;;  %435 = vadd.xlane.f32.xlu0 %v433_v32  ;;  %v382_v32 = vand.u32 127, %v321_v0 }
  0x25   : > { %vm404_vm9 = vcmp.eq.s32.totalorder %v382_v32, 1  ;;  %vm403_vm10 = vcmp.eq.s32.totalorder %v382_v32, 0  ;;  %vm470_vm11 = vcmp.eq.s32.totalorder %v382_v32, 2 }
  0x27   : > { %394 = vadd.xlane.f32.xlu1 %v333_v9 }
  0x2b   : > { %v638_v33 = vpop.eup %637 }
  0x2c   : > { %v344_v34 = vadd.f32 1.0, %v638_v33  ;;  %v347_v35 = vmul.f32 -0.5, %v638_v33  ;;  %v350_v37 = vand.u32 2147483647, %v638_v33 }
  0x2e   : > { %639 = vlog2.f32 %v344_v34  ;;  %v348_v36 = vadd.f32 1.0, %v347_v35  ;;  %vm351_vm8 = vcmp.lt.f32.partialorder %v350_v37, 0.0004427343 }
  0x30   : > { %v349_v38 = vmul.f32 %v638_v33, %v348_v36 }
  0x3b   : > { %v640_v39 = vpop.eup %639 }
  0x3c   : > { %v346_v41 = vmul.f32 0.6931472, %v640_v39 }
  0x3e   : > { %v352_v42 = vsel %vm351_vm8, %v349_v38, %v346_v41 }
  0x3f   : > { %v353_v43 = vadd.f32 %v352_v42, %v339_v40 }
  0x41   : > { %v356_v44 = vmul.f32 %v353_v43, %v333_v9 }
  0x43   : > { %384 = vadd.xlane.f32.xlu0 %v356_v44 }
  0xa4   : > { %v418_v45 = vpop.xlane.xlu0 %417  ;;  %v416_v46 = vpop.xlane.xlu1 %415 }
  0xa5   : > { %v420_v49 = vcvt.f32.s32 %v418_v45  ;;  %v419_v55 = vcvt.f32.s32 %v416_v46 }
  0xa7   : > { %v421_v54 = vshll.u32 %v420_v49, 16 }
  0xa8   : > { %v438_v47 = vpop.xlane.xlu0 %437  ;;  %v458_v48 = vpop.xlane.xlu1 %457 }
  0xa9   : > { %v440_v50 = vcvt.f32.s32 %v438_v47  ;;  %v460_v51 = vcvt.f32.s32 %v458_v48  ;;  %v422_v60 = vadd.s32 %v421_v54, %v419_v55 }
  0xab   : > { %v441_v56 = vshll.u32 %v440_v50, 16  ;;  %v461_v58 = vshll.u32 %v460_v51, 16  ;;  %v423_v2 = vrot.slane %v422_v60, 4 }
  0xac   : > { %v436_v52 = vpop.xlane.xlu0 %435  ;;  %v456_v53 = vpop.xlane.xlu1 %455 }
  0xad   : > { %v439_v57 = vcvt.f32.s32 %v436_v52  ;;  %v459_v59 = vcvt.f32.s32 %v456_v53  ;;  %v424_v6 = vadd.s32 %v423_v2, %v422_v60 }
  0xaf   : > { %v442_v62 = vadd.s32 %v441_v56, %v439_v57  ;;  %v462_v63 = vadd.s32 %v461_v58, %v459_v59  ;;  %v425_v12 = vrot.slane %v424_v6, 2 }
  0xb0   : > { %v395_v61 = vpop.xlane.xlu1 %394 }
  0xb1   : > { %v396_v1 = vrot.slane %v395_v61, 4  ;;  %v443_v3 = vrot.slane %v442_v62, 4  ;;  %v463_v4 = vrot.slane %v462_v63, 4  ;;  %v426_v18 = vadd.s32 %v425_v12, %v424_v6 }
  0xb3   : > { %v397_v5 = vadd.f32 %v396_v1, %v395_v61  ;;  %v444_v7 = vadd.s32 %v443_v3, %v442_v62  ;;  %v464_v8 = vadd.s32 %v463_v4, %v462_v63  ;;  %v427_v24 = vrot.slane %v426_v18, 1 }
  0xb5   : > { %v398_v9 = vrot.slane %v397_v5, 2  ;;  %v445_v13 = vrot.slane %v444_v7, 2  ;;  %v465_v15 = vrot.slane %v464_v8, 2  ;;  %v428_v29 = vadd.s32 %v427_v24, %v426_v18 }
  0xb7   : > { %v399_v16 = vadd.f32 %v398_v9, %v397_v5  ;;  %v446_v19 = vadd.s32 %v445_v13, %v444_v7  ;;  %v466_v21 = vadd.s32 %v465_v15, %v464_v8 }
  0xb9   : > { %v400_v22 = vrot.slane %v399_v16, 1  ;;  %v447_v25 = vrot.slane %v446_v19, 1  ;;  %v467_v27 = vrot.slane %v466_v21, 1 }
  0xbb   : > { %v401_v28 = vadd.f32 %v400_v22, %v399_v16  ;;  %v448_v30 = vadd.s32 %v447_v25, %v446_v19  ;;  %v468_v31 = vadd.s32 %v467_v27, %v466_v21 }
  0xcc   : > { %v385_v10 = vpop.xlane.xlu0 %384 }
  0xcd   : > { %v386_v11 = vrot.slane %v385_v10, 4 }
  0xcf   : > { %v387_v14 = vadd.f32 %v386_v11, %v385_v10 }
  0xd1   : > { %v388_v17 = vrot.slane %v387_v14, 2 }
  0xd3   : > { %v389_v20 = vadd.f32 %v388_v17, %v387_v14 }
  0xd5   : > { %v390_v23 = vrot.slane %v389_v20, 1 }
  0xd7   : > { %v391_v26 = vadd.f32 %v390_v23, %v389_v20 }
  0xd9   : > { %602 = vpush %v391_v26 }
  0xda   : > { %604 = vpush %v401_v28 }
  0xdb   : > { %606 = vpush %v428_v29 }
  0xdc   : > { %608 = vpush %v448_v30 }
  0xdd   : > { %610 = vpush %v468_v31 }
 0x10a   : > { %s603_s11 = spop %602 }
 0x10b   : > { %v407_v33 = vstv %s603_s11  ;;  %s605_s12 = spop %604 }
 0x10c   : > { %v405_v34 = vstv %s605_s12  ;;  %s607_s16 = spop %606 }
 0x10d   : > { %v406_v35 = vsel %vm404_vm9, %v405_v34, 0.0  ;;  %s609_s17 = spop %608  ;;  %v475_v39 = vstv %s607_s16 }
 0x10e   : > { %v408_v36 = vsel %vm403_vm10, %v407_v33, %v406_v35  ;;  %v473_v37 = vstv %s609_s17  ;;  %s611_s18 = spop %610 }
 0x10f   : > { %409 = vst [vmem:[%s307_s15] sm:$0x1] %v408_v36  ;;  %v471_v0 = vstv %s611_s18 }
 0x110   : > { %v472_v38 = vsel %vm470_vm11, %v471_v0, 0 }
 0x111   : > { %v474_v40 = vsel %vm404_vm9, %v473_v37, %v472_v38 }
 0x112   : > { %v476_v41 = vsel %vm403_vm10, %v475_v39, %v474_v40 }
 0x113   : > { %477 = vst [vmem:[%s310_s24] sm:$0x1] %v476_v41 }
 0x114 PF: > { %s17_s22 = sadd.s32 1, %s663_s22   ;;  %s772_s20 = smov %s659_s21 }
 0x115   : > { %p14_p6 = scmp.ge.s32.totalorder %s17_s22, 4   ;;  %s773_s21 = smov %s775_s0 }
 0x117   :  { %16 = sbr.rel (!%p14_p6) target bundleno = 2 (0x2), region = 88 }

</bundles_post_ra>
